<compile_context>
chip_gen: v7x
topology: tpu7x:2x2x1
jax: 0.10.0
libtpu: 0.0.40
codegen_flags: <defaults>
</compile_context>

<pallas_src>
import numpy as np

import jax
import jax.numpy as jnp
from jax.experimental import pallas as pl

# ------------------------- configuration (small) --------------------------
INPUT_DIM = 79 + 20 + 89        # 188, lang2vec feature one-hot dimension
INPUT_PAD = 256                 # lane-padded feature dimension (zero padded)
LANG_HIDDEN = 16                # Lang_MLP hidden_dim
LANG_DIM = 8                    # Lang_MLP output / PGN conditioning dim
HIDDEN = 32                     # backbone hidden size (lora_A == lora_B == HIDDEN)
SEQ = 8
BATCH = 2
LORA_R = 4
LORA_ALPHA = 8
SCALING = LORA_ALPHA / LORA_R
VOCAB = 64
LORA_KEYS = ("query", "key", "value")   # target_modules of the LoraConfig
N_PROJ = len(LORA_KEYS)

POSSIBLE_LANGS = ['eng', 'deu', 'fra', 'heb', 'hun', 'jpn', 'kor', 'swe',
                  'zho', 'akk', 'kaz', 'kmr', 'mar', 'san', 'tam', 'yor']
NUM_LANGS = len(POSSIBLE_LANGS)
LANG_TO_ID = {lan: i for i, lan in enumerate(POSSIBLE_LANGS)}


# ==================== fused forward kernel (single launch) =================
def _llm_fused_kernel(
    lang_ids_ref,    # (B, 1)    int32  language id per batch element
    tok_ids_ref,     # (B*S, 1)  int32  token id per flattened row
    mask_ref,        # (1, B*S)  f32    attention (key) mask, flattened
    langs_tbl_ref,   # (NUM_LANGS, INPUT_PAD)
    fc1_w_ref,       # (INPUT_PAD, LANG_HIDDEN)
    fc1_b_ref,       # (1, LANG_HIDDEN)
    fc2_w_ref,       # (LANG_HIDDEN, LANG_DIM)
    fc2_b_ref,       # (1, LANG_DIM)
    tok_emb_ref,     # (VOCAB, HIDDEN)
    w_qkv_ref,       # (HIDDEN, 3*HIDDEN)            fused q|k|v base weight
    w_out_ref,       # (HIDDEN, HIDDEN)
    pgn_a2d_ref,     # (LANG_DIM*HIDDEN, 3*LORA_R)   packed PGN A params
    pgn_b2d_ref,     # (LANG_DIM*3*LORA_R, 3*HIDDEN) packed PGN B (x scaling)
    sel_h_ref,       # (LANG_DIM, LANG_DIM*HIDDEN)   sel_h[i, i*H+h]  = 1
    tile_h_ref,      # (HIDDEN,  LANG_DIM*HIDDEN)    tile_h[h, i*H+h] = 1
    sel_a_ref,       # (LANG_DIM, LANG_DIM*3R)       sel_a[i, i*3R+c] = 1
    tile_a_ref,      # (3*LORA_R, LANG_DIM*3R)       tile_a[c, i*3R+c]= 1
    rowrep_ref,      # (B*S, B)                      rowrep[r, r//S]  = 1
    blk_bias_ref,    # (B*S, B*S)  0 inside a batch element, -1e9 across
    out_ref,         # (B*S, HIDDEN)
):
    f32 = jnp.float32
    b = lang_ids_ref.shape[0]
    n = tok_ids_ref.shape[0]
    n_langs = langs_tbl_ref.shape[0]
    vocab, hidden = tok_emb_ref.shape

    # ---- Lang_MLP: integer id -> one-hot gather -> 2-layer MLP ----
    lang_oh = (jax.lax.broadcasted_iota(jnp.int32, (b, n_langs), 1)
               == lang_ids_ref[...]).astype(f32)                        # (B, NL)
    lang_1hot = jnp.dot(lang_oh, langs_tbl_ref[...],
                        preferred_element_type=f32)                     # (B, 256)
    hmlp = jnp.maximum(
        jnp.dot(lang_1hot, fc1_w_ref[...], preferred_element_type=f32)
        + fc1_b_ref[...], 0.0)
    embs = (jnp.dot(hmlp, fc2_w_ref[...], preferred_element_type=f32)
            + fc2_b_ref[...])                                           # (B, LD)

    # ---- token embedding lookup as a one-hot matmul ----
    tok_oh = (jax.lax.broadcasted_iota(jnp.int32, (n, vocab), 1)
              == tok_ids_ref[...]).astype(f32)                          # (n, V)
    x = jnp.dot(tok_oh, tok_emb_ref[...], preferred_element_type=f32)   # (n, H)

    # ---- fused q/k/v: base projection + PGN-generated batched LoRA ----
    base = jnp.dot(x, w_qkv_ref[...], preferred_element_type=f32)       # (n, 3H)

    # e_rows[r, i] = lang_embs[batch(r), i]
    e_rows = jnp.dot(rowrep_ref[...], embs, preferred_element_type=f32)  # (n, LD)
    # z[r, i*H+h] = e_rows[r, i] * x[r, h]      (lane-expanded outer product)
    z = (jnp.dot(e_rows, sel_h_ref[...], preferred_element_type=f32)
         * jnp.dot(x, tile_h_ref[...], preferred_element_type=f32))      # (n, LD*H)
    # a[r, p*R+r'] = (x[r] @ W_A[p, batch(r)])[r']   for p in (query,key,value)
    a = jnp.dot(z, pgn_a2d_ref[...], preferred_element_type=f32)         # (n, 3R)
    # z2[r, i*3R+c] = e_rows[r, i] * a[r, c]
    z2 = (jnp.dot(e_rows, sel_a_ref[...], preferred_element_type=f32)
          * jnp.dot(a, tile_a_ref[...], preferred_element_type=f32))     # (n, LD*3R)
    # lora[r, p*H+o] = scaling * (a_p[r] @ W_B[p, batch(r)])[o]  (scaling folded)
    lora = jnp.dot(z2, pgn_b2d_ref[...], preferred_element_type=f32)     # (n, 3H)

    qkv = base + lora                                                    # (n, 3H)
    q = qkv[:, 0:hidden]
    k = qkv[:, hidden:2 * hidden]
    v = qkv[:, 2 * hidden:3 * hidden]

    # ---- attention, block-diagonal over the flattened batch rows ----
    scores = jnp.dot(q, k.T, preferred_element_type=f32) * (1.0 / hidden ** 0.5)
    scores = scores + blk_bias_ref[...] + (1.0 - mask_ref[...]) * (-1e9)
    m = jnp.max(scores, axis=-1, keepdims=True)
    p = jnp.exp(scores - m)
    attn = p / jnp.sum(p, axis=-1, keepdims=True)
    ctx = jnp.dot(attn, v, preferred_element_type=f32)                   # (n, H)

    # ---- output projection + residual ----
    out = x + jnp.dot(ctx, w_out_ref[...], preferred_element_type=f32)
    out_ref[...] = out.astype(out_ref.dtype)


@jax.jit
def llm_forward(packed, batch_input_ids, batch_attention_mask, lang_ids):
    b, s = batch_input_ids.shape
    n = b * s
    tok_ids = batch_input_ids.reshape(n, 1).astype(jnp.int32)
    lang_ids2 = lang_ids.reshape(b, 1).astype(jnp.int32)
    mask = batch_attention_mask.reshape(1, n).astype(jnp.float32)
    out = pl.pallas_call(
        _llm_fused_kernel,
        out_shape=jax.ShapeDtypeStruct((n, HIDDEN), jnp.float32),
    )(lang_ids2, tok_ids, mask,
      packed["langs_tbl"], packed["fc1_w"], packed["fc1_b"],
      packed["fc2_w"], packed["fc2_b"],
      packed["tok_emb"], packed["w_qkv"], packed["w_out"],
      packed["pgn_A2d"], packed["pgn_B2d"],
      packed["sel_h"], packed["tile_h"], packed["sel_a"], packed["tile_a"],
      packed["rowrep"], packed["block_bias"])
    return out.reshape(b, s, HIDDEN)


# ============================ parameter setup ==============================
def init_params(key):
    p = {}
    ks = jax.random.split(key, 16)
    # Lang_MLP (fc1: 188->hidden, fc2: hidden->lang_dim)
    p["fc1_w"] = 0.02 * jax.random.normal(ks[0], (INPUT_DIM, LANG_HIDDEN), jnp.float32)
    p["fc1_b"] = jnp.zeros((LANG_HIDDEN,), jnp.float32)
    p["fc2_w"] = 0.02 * jax.random.normal(ks[1], (LANG_HIDDEN, LANG_DIM), jnp.float32)
    p["fc2_b"] = jnp.zeros((LANG_DIM,), jnp.float32)
    # PGN hypernetwork params (same init as the torch module: A ~ N(0,0.01), B = 0)
    p["pgn_A"] = {k: 0.01 * jax.random.normal(jax.random.fold_in(ks[2], i),
                                              (LANG_DIM, HIDDEN, LORA_R), jnp.float32)
                  for i, k in enumerate(LORA_KEYS)}
    p["pgn_B"] = {k: jnp.zeros((LANG_DIM, LORA_R, HIDDEN), jnp.float32)
                  for k in LORA_KEYS}
    # synthetic frozen backbone (stand-in for the pretrained HF model)
    p["tok_emb"] = 0.02 * jax.random.normal(ks[3], (VOCAB, HIDDEN), jnp.float32)
    p["w_query"] = 0.02 * jax.random.normal(ks[4], (HIDDEN, HIDDEN), jnp.float32)
    p["w_key"] = 0.02 * jax.random.normal(ks[5], (HIDDEN, HIDDEN), jnp.float32)
    p["w_value"] = 0.02 * jax.random.normal(ks[6], (HIDDEN, HIDDEN), jnp.float32)
    p["w_out"] = 0.02 * jax.random.normal(ks[7], (HIDDEN, HIDDEN), jnp.float32)
    # deterministic synthetic "lang2vec" one-hot features for every language
    # TODO(synk): real features come from lang2vec get_features(); synthesized here.
    p["langs_table"] = jax.random.bernoulli(
        ks[8], 0.3, (NUM_LANGS, INPUT_DIM)).astype(jnp.float32)
    return p


def pack_params(p):
    """One-time repack of raw module params into fused, lane-dense kernel
    operands (the LoRA scaling alpha/r is folded into pgn_B2d here)."""
    packed = {}
    packed["langs_tbl"] = jnp.pad(p["langs_table"],
                                  ((0, 0), (0, INPUT_PAD - INPUT_DIM)))
    packed["fc1_w"] = jnp.pad(p["fc1_w"], ((0, INPUT_PAD - INPUT_DIM), (0, 0)))
    packed["fc1_b"] = p["fc1_b"].reshape(1, -1)
    packed["fc2_w"] = p["fc2_w"]
    packed["fc2_b"] = p["fc2_b"].reshape(1, -1)
    packed["tok_emb"] = p["tok_emb"]
    packed["w_qkv"] = jnp.concatenate(
        [p["w_query"], p["w_key"], p["w_value"]], axis=1)             # (H, 3H)
    packed["w_out"] = p["w_out"]

    # pgn_A2d[i*H + h, p*R + r] = pgn_A[key_p][i, h, r]
    packed["pgn_A2d"] = jnp.stack(
        [p["pgn_A"][k] for k in LORA_KEYS], axis=2).reshape(
            LANG_DIM * HIDDEN, N_PROJ * LORA_R)
    # pgn_B2d[i*3R + p*R + r, p'*H + o] = scaling * pgn_B[key_p][i, r, o] * (p==p')
    bd = jnp.zeros((LANG_DIM, N_PROJ, LORA_R, N_PROJ, HIDDEN), jnp.float32)
    for pi, key in enumerate(LORA_KEYS):
        bd = bd.at[:, pi, :, pi, :].set(p["pgn_B"][key])
    packed["pgn_B2d"] = (SCALING * bd).reshape(
        LANG_DIM * N_PROJ * LORA_R, N_PROJ * HIDDEN)

    # constant selector / tiling / masking matrices (host-built once)
    lh = LANG_DIM * HIDDEN
    la = LANG_DIM * N_PROJ * LORA_R
    n = BATCH * SEQ
    jh = np.arange(lh)
    ja = np.arange(la)
    rows = np.arange(n)
    packed["sel_h"] = jnp.asarray(
        (jh[None, :] // HIDDEN == np.arange(LANG_DIM)[:, None]).astype(np.float32))
    packed["tile_h"] = jnp.asarray(
        (jh[None, :] % HIDDEN == np.arange(HIDDEN)[:, None]).astype(np.float32))
    packed["sel_a"] = jnp.asarray(
        (ja[None, :] // (N_PROJ * LORA_R)
         == np.arange(LANG_DIM)[:, None]).astype(np.float32))
    packed["tile_a"] = jnp.asarray(
        (ja[None, :] % (N_PROJ * LORA_R)
         == np.arange(N_PROJ * LORA_R)[:, None]).astype(np.float32))
    packed["rowrep"] = jnp.asarray(
        (rows[:, None] // SEQ == np.arange(BATCH)[None, :]).astype(np.float32))
    packed["block_bias"] = jnp.asarray(
        np.where(rows[:, None] // SEQ == rows[None, :] // SEQ,
                 0.0, -1e9).astype(np.float32))
    return packed


# ===================== pure-JAX reference (for checking) ===================
def reference_forward(params, batch_input_ids, batch_attention_mask, lang_ids):
    lang_1hot = params["langs_table"][lang_ids]                         # (B, 188)
    h = jnp.maximum(lang_1hot @ params["fc1_w"] + params["fc1_b"], 0.0)
    embs = h @ params["fc2_w"] + params["fc2_b"]                        # (B, LD)
    w_a = {k: jnp.einsum("bi,ihr->bhr", embs, params["pgn_A"][k]) for k in LORA_KEYS}
    w_b = {k: jnp.einsum("bi,iro->bro", embs, params["pgn_B"][k]) for k in LORA_KEYS}
    x = params["tok_emb"][batch_input_ids]                              # (B, S, H)

    def lora_linear(xx, wbase, a, bmat):
        base = jnp.einsum("bsd,de->bse", xx, wbase)
        low = jnp.einsum("bsd,bdr->bsr", xx, a)
        return base + SCALING * jnp.einsum("bsr,bre->bse", low, bmat)

    q = lora_linear(x, params["w_query"], w_a["query"], w_b["query"])
    k = lora_linear(x, params["w_key"], w_a["key"], w_b["key"])
    v = lora_linear(x, params["w_value"], w_a["value"], w_b["value"])
    scores = jnp.einsum("bqd,bkd->bqk", q, k) / jnp.sqrt(jnp.float32(HIDDEN))
    bias = (1.0 - batch_attention_mask.astype(jnp.float32))[:, None, :] * -1e9
    attn = jax.nn.softmax(scores + bias, axis=-1)
    ctx = jnp.einsum("bqk,bkd->bqd", attn, v)
    return x + jnp.einsum("bsd,de->bse", ctx, params["w_out"])


# ================================== main ===================================
if __name__ == "__main__":
    key = jax.random.PRNGKey(0)
    pkey, dkey = jax.random.split(key)
    params = init_params(pkey)
    packed = pack_params(params)

    batch_input_ids = jax.random.randint(dkey, (BATCH, SEQ), 0, VOCAB, dtype=jnp.int32)
    batch_attention_mask = jnp.ones((BATCH, SEQ), jnp.int32).at[1, SEQ - 2:].set(0)
    batch_langs = ["eng", "deu"]
    lang_ids = jnp.asarray([LANG_TO_ID[lan] for lan in batch_langs], dtype=jnp.int32)

    repre = llm_forward(packed, batch_input_ids, batch_attention_mask, lang_ids)
    repre = jax.block_until_ready(repre)
    assert repre.shape == (BATCH, SEQ, HIDDEN), repre.shape

    # correctness: fused kernel vs pure-JAX reference of the whole forward
    ref = reference_forward(params, batch_input_ids, batch_attention_mask, lang_ids)
    assert jnp.allclose(repre, ref, atol=1e-4), float(jnp.abs(repre - ref).max())

    # stress the LoRA branch with non-zero W_A / W_B (pgn_B is zero-initialized,
    # so the main test exercises only the frozen backbone path)
    params_nz = dict(params)
    params_nz["pgn_A"] = {
        k: 10.0 * jax.random.normal(jax.random.fold_in(dkey, 100 + i),
                                    (LANG_DIM, HIDDEN, LORA_R), jnp.float32)
        for i, k in enumerate(LORA_KEYS)}
    params_nz["pgn_B"] = {
        k: 10.0 * jax.random.normal(jax.random.fold_in(dkey, 200 + i),
                                    (LANG_DIM, LORA_R, HIDDEN), jnp.float32)
        for i, k in enumerate(LORA_KEYS)}
    packed_nz = pack_params(params_nz)
    out_nz = llm_forward(packed_nz, batch_input_ids, batch_attention_mask, lang_ids)
    out_nz = jax.block_until_ready(out_nz)
    ref_nz = reference_forward(params_nz, batch_input_ids, batch_attention_mask, lang_ids)
    assert jnp.allclose(out_nz, ref_nz, atol=1e-4), float(jnp.abs(out_nz - ref_nz).max())

    print("KERNEL_OK")
</pallas_src>

<mosaic_0001>
module attributes {stable_mosaic.version = 11 : i64} {
  func.func @_llm_fused_kernel(%arg0: memref<2x1xi32, #tpu.memory_space<vmem>>, %arg1: memref<16x1xi32, #tpu.memory_space<vmem>>, %arg2: memref<1x16xf32, #tpu.memory_space<vmem>>, %arg3: memref<16x256xf32, #tpu.memory_space<vmem>>, %arg4: memref<256x16xf32, #tpu.memory_space<vmem>>, %arg5: memref<1x16xf32, #tpu.memory_space<vmem>>, %arg6: memref<16x8xf32, #tpu.memory_space<vmem>>, %arg7: memref<1x8xf32, #tpu.memory_space<vmem>>, %arg8: memref<64x32xf32, #tpu.memory_space<vmem>>, %arg9: memref<32x96xf32, #tpu.memory_space<vmem>>, %arg10: memref<32x32xf32, #tpu.memory_space<vmem>>, %arg11: memref<256x12xf32, #tpu.memory_space<vmem>>, %arg12: memref<96x96xf32, #tpu.memory_space<vmem>>, %arg13: memref<8x256xf32, #tpu.memory_space<vmem>>, %arg14: memref<32x256xf32, #tpu.memory_space<vmem>>, %arg15: memref<8x96xf32, #tpu.memory_space<vmem>>, %arg16: memref<12x96xf32, #tpu.memory_space<vmem>>, %arg17: memref<16x2xf32, #tpu.memory_space<vmem>>, %arg18: memref<16x16xf32, #tpu.memory_space<vmem>>, %arg19: memref<16x32xf32, #tpu.memory_space<vmem>>) attributes {dimension_semantics = [], scalar_prefetch = 0 : i64, scratch_operands = 0 : i64, tpu.core_type = #tpu.core_type<tc>} {
    %0 = tpu.iota {dimensions = array<i32: 1>} : vector<2x16xi32>
    %c0 = arith.constant 0 : index
    %c0_0 = arith.constant 0 : index
    %1 = vector.load %arg0[%c0, %c0_0] : memref<2x1xi32, #tpu.memory_space<vmem>>, vector<2x1xi32>
    %2 = vector.broadcast %1 : vector<2x1xi32> to vector<2x16xi32>
    %3 = arith.cmpi eq, %0, %2 : vector<2x16xi32>
    %4 = arith.extui %3 : vector<2x16xi1> to vector<2x16xi32>
    %5 = arith.sitofp %4 : vector<2x16xi32> to vector<2x16xf32>
    %c0_1 = arith.constant 0 : index
    %c0_2 = arith.constant 0 : index
    %6 = vector.load %arg3[%c0_1, %c0_2] : memref<16x256xf32, #tpu.memory_space<vmem>>, vector<16x256xf32>
    %cst = arith.constant dense<0.000000e+00> : vector<2x256xf32>
    %7 = tpu.matmul %5, %6, %cst {dimension_numbers = #tpu.dot_dimension_numbers<[1], [0], [0], [1], [0, 0, 1, 1], [], []>} : vector<2x16xf32>, vector<16x256xf32>, vector<2x256xf32> -> vector<2x256xf32>
    %c0_3 = arith.constant 0 : index
    %c0_4 = arith.constant 0 : index
    %8 = vector.load %arg4[%c0_3, %c0_4] : memref<256x16xf32, #tpu.memory_space<vmem>>, vector<256x16xf32>
    %cst_5 = arith.constant dense<0.000000e+00> : vector<2x16xf32>
    %9 = tpu.matmul %7, %8, %cst_5 {dimension_numbers = #tpu.dot_dimension_numbers<[1], [0], [0], [1], [0, 0, 1, 1], [], []>} : vector<2x256xf32>, vector<256x16xf32>, vector<2x16xf32> -> vector<2x16xf32>
    %c0_6 = arith.constant 0 : index
    %c0_7 = arith.constant 0 : index
    %10 = vector.load %arg5[%c0_6, %c0_7] : memref<1x16xf32, #tpu.memory_space<vmem>>, vector<1x16xf32>
    %11 = vector.broadcast %10 : vector<1x16xf32> to vector<2x16xf32>
    %12 = arith.addf %9, %11 : vector<2x16xf32>
    %cst_8 = arith.constant 0.000000e+00 : f32
    %13 = vector.broadcast %cst_8 : f32 to vector<2x16xf32>
    %14 = arith.maximumf %12, %13 : vector<2x16xf32>
    %c0_9 = arith.constant 0 : index
    %c0_10 = arith.constant 0 : index
    %15 = vector.load %arg6[%c0_9, %c0_10] : memref<16x8xf32, #tpu.memory_space<vmem>>, vector<16x8xf32>
    %cst_11 = arith.constant dense<0.000000e+00> : vector<2x8xf32>
    %16 = tpu.matmul %14, %15, %cst_11 {dimension_numbers = #tpu.dot_dimension_numbers<[1], [0], [0], [1], [0, 0, 1, 1], [], []>} : vector<2x16xf32>, vector<16x8xf32>, vector<2x8xf32> -> vector<2x8xf32>
    %c0_12 = arith.constant 0 : index
    %c0_13 = arith.constant 0 : index
    %17 = vector.load %arg7[%c0_12, %c0_13] : memref<1x8xf32, #tpu.memory_space<vmem>>, vector<1x8xf32>
    %18 = vector.broadcast %17 : vector<1x8xf32> to vector<2x8xf32>
    %19 = arith.addf %16, %18 : vector<2x8xf32>
    %20 = tpu.iota {dimensions = array<i32: 1>} : vector<16x64xi32>
    %c0_14 = arith.constant 0 : index
    %c0_15 = arith.constant 0 : index
    %21 = vector.load %arg1[%c0_14, %c0_15] : memref<16x1xi32, #tpu.memory_space<vmem>>, vector<16x1xi32>
    %22 = vector.broadcast %21 : vector<16x1xi32> to vector<16x64xi32>
    %23 = arith.cmpi eq, %20, %22 : vector<16x64xi32>
    %24 = arith.extui %23 : vector<16x64xi1> to vector<16x64xi32>
    %25 = arith.sitofp %24 : vector<16x64xi32> to vector<16x64xf32>
    %c0_16 = arith.constant 0 : index
    %c0_17 = arith.constant 0 : index
    %26 = vector.load %arg8[%c0_16, %c0_17] : memref<64x32xf32, #tpu.memory_space<vmem>>, vector<64x32xf32>
    %cst_18 = arith.constant dense<0.000000e+00> : vector<16x32xf32>
    %27 = tpu.matmul %25, %26, %cst_18 {dimension_numbers = #tpu.dot_dimension_numbers<[1], [0], [0], [1], [0, 0, 1, 1], [], []>} : vector<16x64xf32>, vector<64x32xf32>, vector<16x32xf32> -> vector<16x32xf32>
    %c0_19 = arith.constant 0 : index
    %c0_20 = arith.constant 0 : index
    %28 = vector.load %arg9[%c0_19, %c0_20] : memref<32x96xf32, #tpu.memory_space<vmem>>, vector<32x96xf32>
    %cst_21 = arith.constant dense<0.000000e+00> : vector<16x96xf32>
    %29 = tpu.matmul %27, %28, %cst_21 {dimension_numbers = #tpu.dot_dimension_numbers<[1], [0], [0], [1], [0, 0, 1, 1], [], []>} : vector<16x32xf32>, vector<32x96xf32>, vector<16x96xf32> -> vector<16x96xf32>
    %c0_22 = arith.constant 0 : index
    %c0_23 = arith.constant 0 : index
    %30 = vector.load %arg17[%c0_22, %c0_23] : memref<16x2xf32, #tpu.memory_space<vmem>>, vector<16x2xf32>
    %cst_24 = arith.constant dense<0.000000e+00> : vector<16x8xf32>
    %31 = tpu.matmul %30, %19, %cst_24 {dimension_numbers = #tpu.dot_dimension_numbers<[1], [0], [0], [1], [0, 0, 1, 1], [], []>} : vector<16x2xf32>, vector<2x8xf32>, vector<16x8xf32> -> vector<16x8xf32>
    %c0_25 = arith.constant 0 : index
    %c0_26 = arith.constant 0 : index
    %32 = vector.load %arg13[%c0_25, %c0_26] : memref<8x256xf32, #tpu.memory_space<vmem>>, vector<8x256xf32>
    %cst_27 = arith.constant dense<0.000000e+00> : vector<16x256xf32>
    %33 = tpu.matmul %31, %32, %cst_27 {dimension_numbers = #tpu.dot_dimension_numbers<[1], [0], [0], [1], [0, 0, 1, 1], [], []>} : vector<16x8xf32>, vector<8x256xf32>, vector<16x256xf32> -> vector<16x256xf32>
    %c0_28 = arith.constant 0 : index
    %c0_29 = arith.constant 0 : index
    %34 = vector.load %arg14[%c0_28, %c0_29] : memref<32x256xf32, #tpu.memory_space<vmem>>, vector<32x256xf32>
    %cst_30 = arith.constant dense<0.000000e+00> : vector<16x256xf32>
    %35 = tpu.matmul %27, %34, %cst_30 {dimension_numbers = #tpu.dot_dimension_numbers<[1], [0], [0], [1], [0, 0, 1, 1], [], []>} : vector<16x32xf32>, vector<32x256xf32>, vector<16x256xf32> -> vector<16x256xf32>
    %36 = arith.mulf %33, %35 : vector<16x256xf32>
    %c0_31 = arith.constant 0 : index
    %c0_32 = arith.constant 0 : index
    %37 = vector.load %arg11[%c0_31, %c0_32] : memref<256x12xf32, #tpu.memory_space<vmem>>, vector<256x12xf32>
    %cst_33 = arith.constant dense<0.000000e+00> : vector<16x12xf32>
    %38 = tpu.matmul %36, %37, %cst_33 {dimension_numbers = #tpu.dot_dimension_numbers<[1], [0], [0], [1], [0, 0, 1, 1], [], []>} : vector<16x256xf32>, vector<256x12xf32>, vector<16x12xf32> -> vector<16x12xf32>
    %c0_34 = arith.constant 0 : index
    %c0_35 = arith.constant 0 : index
    %39 = vector.load %arg15[%c0_34, %c0_35] : memref<8x96xf32, #tpu.memory_space<vmem>>, vector<8x96xf32>
    %cst_36 = arith.constant dense<0.000000e+00> : vector<16x96xf32>
    %40 = tpu.matmul %31, %39, %cst_36 {dimension_numbers = #tpu.dot_dimension_numbers<[1], [0], [0], [1], [0, 0, 1, 1], [], []>} : vector<16x8xf32>, vector<8x96xf32>, vector<16x96xf32> -> vector<16x96xf32>
    %c0_37 = arith.constant 0 : index
    %c0_38 = arith.constant 0 : index
    %41 = vector.load %arg16[%c0_37, %c0_38] : memref<12x96xf32, #tpu.memory_space<vmem>>, vector<12x96xf32>
    %cst_39 = arith.constant dense<0.000000e+00> : vector<16x96xf32>
    %42 = tpu.matmul %38, %41, %cst_39 {dimension_numbers = #tpu.dot_dimension_numbers<[1], [0], [0], [1], [0, 0, 1, 1], [], []>} : vector<16x12xf32>, vector<12x96xf32>, vector<16x96xf32> -> vector<16x96xf32>
    %43 = arith.mulf %40, %42 : vector<16x96xf32>
    %c0_40 = arith.constant 0 : index
    %c0_41 = arith.constant 0 : index
    %44 = vector.load %arg12[%c0_40, %c0_41] : memref<96x96xf32, #tpu.memory_space<vmem>>, vector<96x96xf32>
    %cst_42 = arith.constant dense<0.000000e+00> : vector<16x96xf32>
    %45 = tpu.matmul %43, %44, %cst_42 {dimension_numbers = #tpu.dot_dimension_numbers<[1], [0], [0], [1], [0, 0, 1, 1], [], []>} : vector<16x96xf32>, vector<96x96xf32>, vector<16x96xf32> -> vector<16x96xf32>
    %46 = arith.addf %29, %45 : vector<16x96xf32>
    %47 = vector.extract_strided_slice %46 {offsets = [0, 0], sizes = [16, 32], strides = [1, 1]} : vector<16x96xf32> to vector<16x32xf32>
    %48 = vector.extract_strided_slice %46 {offsets = [0, 32], sizes = [16, 32], strides = [1, 1]} : vector<16x96xf32> to vector<16x32xf32>
    %49 = vector.extract_strided_slice %46 {offsets = [0, 64], sizes = [16, 32], strides = [1, 1]} : vector<16x96xf32> to vector<16x32xf32>
    %50 = tpu.transpose %48, [1, 0] : vector<16x32xf32> -> vector<32x16xf32>
    %cst_43 = arith.constant dense<0.000000e+00> : vector<16x16xf32>
    %51 = tpu.matmul %47, %50, %cst_43 {dimension_numbers = #tpu.dot_dimension_numbers<[1], [0], [0], [1], [0, 0, 1, 1], [], []>} : vector<16x32xf32>, vector<32x16xf32>, vector<16x16xf32> -> vector<16x16xf32>
    %cst_44 = arith.constant 0.176776692 : f32
    %52 = vector.broadcast %cst_44 : f32 to vector<16x16xf32>
    %53 = arith.mulf %51, %52 : vector<16x16xf32>
    %c0_45 = arith.constant 0 : index
    %c0_46 = arith.constant 0 : index
    %54 = vector.load %arg18[%c0_45, %c0_46] : memref<16x16xf32, #tpu.memory_space<vmem>>, vector<16x16xf32>
    %55 = arith.addf %53, %54 : vector<16x16xf32>
    %c0_47 = arith.constant 0 : index
    %c0_48 = arith.constant 0 : index
    %56 = vector.load %arg2[%c0_47, %c0_48] : memref<1x16xf32, #tpu.memory_space<vmem>>, vector<1x16xf32>
    %cst_49 = arith.constant 1.000000e+00 : f32
    %57 = vector.broadcast %cst_49 : f32 to vector<1x16xf32>
    %58 = arith.subf %57, %56 : vector<1x16xf32>
    %cst_50 = arith.constant -1.000000e+09 : f32
    %59 = vector.broadcast %cst_50 : f32 to vector<1x16xf32>
    %60 = arith.mulf %58, %59 : vector<1x16xf32>
    %61 = vector.broadcast %60 : vector<1x16xf32> to vector<16x16xf32>
    %62 = arith.addf %55, %61 : vector<16x16xf32>
    %cst_51 = arith.constant dense<0xFF800000> : vector<16xf32>
    %63 = vector.multi_reduction <maximumf>, %62, %cst_51 [1] : vector<16x16xf32> to vector<16xf32>
    %64 = vector.shape_cast %63 : vector<16xf32> to vector<16x1xf32>
    %65 = vector.broadcast %64 : vector<16x1xf32> to vector<16x16xf32>
    %66 = arith.subf %62, %65 : vector<16x16xf32>
    %67 = math.exp %66 : vector<16x16xf32>
    %cst_52 = arith.constant dense<0.000000e+00> : vector<16xf32>
    %68 = vector.multi_reduction <add>, %67, %cst_52 [1] : vector<16x16xf32> to vector<16xf32>
    %69 = vector.shape_cast %68 : vector<16xf32> to vector<16x1xf32>
    %70 = vector.broadcast %69 : vector<16x1xf32> to vector<16x16xf32>
    %71 = arith.divf %67, %70 : vector<16x16xf32>
    %cst_53 = arith.constant dense<0.000000e+00> : vector<16x32xf32>
    %72 = tpu.matmul %71, %49, %cst_53 {dimension_numbers = #tpu.dot_dimension_numbers<[1], [0], [0], [1], [0, 0, 1, 1], [], []>} : vector<16x16xf32>, vector<16x32xf32>, vector<16x32xf32> -> vector<16x32xf32>
    %c0_54 = arith.constant 0 : index
    %c0_55 = arith.constant 0 : index
    %73 = vector.load %arg10[%c0_54, %c0_55] : memref<32x32xf32, #tpu.memory_space<vmem>>, vector<32x32xf32>
    %cst_56 = arith.constant dense<0.000000e+00> : vector<16x32xf32>
    %74 = tpu.matmul %72, %73, %cst_56 {dimension_numbers = #tpu.dot_dimension_numbers<[1], [0], [0], [1], [0, 0, 1, 1], [], []>} : vector<16x32xf32>, vector<32x32xf32>, vector<16x32xf32> -> vector<16x32xf32>
    %75 = arith.addf %27, %74 : vector<16x32xf32>
    %c0_57 = arith.constant 0 : index
    %c0_58 = arith.constant 0 : index
    %76 = vector.load %arg19[%c0_57, %c0_58] : memref<16x32xf32, #tpu.memory_space<vmem>>, vector<16x32xf32>
    tpu.vector_store %arg19[%c0_57, %c0_58], %75 {strides = array<i32>} : memref<16x32xf32, #tpu.memory_space<vmem>>, vector<16x32xf32>,
    return
  }
}

</mosaic_0001>

<bundles_post_ra>
// kernel: llm_forward.1
= control target key start
LH: loop header
LB: loop body
LE: loop exit
PB: predicated region body
PF: predicated region fallthrough
CT: control target
= control target key end

     0   :  { %s2491_s0 = inlined_call_operand.vmem [shape: s32[2,1], index: 0, kind: input, shape index: {}]   ;;  %s2492_s1 = inlined_call_operand.vmem [shape: s32[16,1], index: 1, kind: input, shape index: {}]   ;;  %s2493_s2 = inlined_call_operand.vmem [shape: f32[1,16], index: 2, kind: input, shape index: {}]   ;;  %s2494_s3 = inlined_call_operand.vmem [shape: f32[16,256], index: 3, kind: input, shape index: {}]   ;;  %s2495_s4 = inlined_call_operand.vmem [shape: f32[256,16], index: 4, kind: input, shape index: {}]   ;;  %s2496_s5 = inlined_call_operand.vmem [shape: f32[1,16], index: 5, kind: input, shape index: {}]   ;;  %s2497_s6 = inlined_call_operand.vmem [shape: f32[16,8], index: 6, kind: input, shape index: {}]   ;;  %s2498_s7 = inlined_call_operand.vmem [shape: f32[1,8], index: 7, kind: input, shape index: {}]   ;;  %s2499_s8 = inlined_call_operand.vmem [shape: f32[64,32], index: 8, kind: input, shape index: {}]   ;;  %s2500_s9 = inlined_call_operand.vmem [shape: f32[32,96], index: 9, kind: input, shape index: {}]   ;;  %s2501_s10 = inlined_call_operand.vmem [shape: f32[32,32], index: 10, kind: input, shape index: {}]   ;;  %s2502_s11 = inlined_call_operand.vmem [shape: f32[256,12], index: 11, kind: input, shape index: {}]   ;;  %s2503_s12 = inlined_call_operand.vmem [shape: f32[96,96], index: 12, kind: input, shape index: {}]   ;;  %s2504_s13 = inlined_call_operand.vmem [shape: f32[8,256], index: 13, kind: input, shape index: {}]   ;;  %s2505_s14 = inlined_call_operand.vmem [shape: f32[32,256], index: 14, kind: input, shape index: {}]   ;;  %s2506_s15 = inlined_call_operand.vmem [shape: f32[8,96], index: 15, kind: input, shape index: {}]   ;;  %s2507_s16 = inlined_call_operand.vmem [shape: f32[12,96], index: 16, kind: input, shape index: {}]   ;;  %s2508_s17 = inlined_call_operand.vmem [shape: f32[16,2], index: 17, kind: input, shape index: {}]   ;;  %s2509_s18 = inlined_call_operand.vmem [shape: f32[16,16], index: 18, kind: input, shape index: {}]   ;;  %s2510_s19 = inlined_call_operand.hbm [shape: f32[16,32], index: 19, kind: output, shape index: {}]  }
   0x1   :  { %2514 = sst [smem:[#allocation5_spill]] %s2491_s0 }
   0x2   :  { %2515 = sst [smem:[#allocation6_spill]] %s2492_s1 }
   0x3   :  { %2516 = sst [smem:[#allocation7_spill]] %s2493_s2 }
   0x4   :  { %2517 = sst [smem:[#allocation8_spill]] %s2494_s3 }
   0x5   :  { %2518 = sst [smem:[#allocation9_spill]] %s2501_s10 }
   0x6   :  { %s2519_s20 = sld [smem:[#allocation5_spill]]  ;;  %s2520_s10 = sld [smem:[#allocation8_spill]]  ;;  %v1959_v2 = vmov 0   ;;  %v1960_v6 = vmov 0.0  }
   0x7   :  { %1915 = vset.pattern.permute.xlu0 %v1959_v2  ;;  %144 = vmatprep.mubr.f32.mxu0 %v1960_v6 }
   0x8   :  { %1916 = vset.pattern.permute.xlu1 %v1959_v2 }
   0xc   :  { %v65_v0 = vld [vmem:[%s2519_s20] sm:$0x3]  ;;  %v73_v1 = vld [vmem:[%s2520_s10 + $0x8] sm:$0xff]  ;;  %v75_v3 = vld [vmem:[%s2520_s10 + $0x18] sm:$0xff] }
   0xd   :  { %v72_v4 = vld [vmem:[%s2520_s10] sm:$0xff]  ;;  %v74_v5 = vld [vmem:[%s2520_s10 + $0x10] sm:$0xff]  ;;  %67 = vperm.xlu0 %1915, %v65_v0   ;;  %v1752_v7 = vpack.c.bf16 %v75_v3, %v73_v1 }
   0xe   :  { %v1754_v8 = vpack.c.bf16 %v74_v5, %v72_v4 }
   0xf   :  { %24 = vsyncpa [#allocation3], 0  ;;  %s2521_s28 = sld [smem:[#allocation6_spill]]  ;;  %1753 = vmatprep.subr.bf16.mxu0 %v1752_v7  ;;  %v167_v10 = vld [vmem:[%s2495_s4 + $0x80] sm:$0xff]  ;;  %v168_v11 = vld [vmem:[%s2495_s4 + $0x88] sm:$0xff]  ;;  %v63_v55 = vlaneseq  ;;  %vm76_vm0 = vcmask 130048  }
  0x10   :  { %1755 = vmatpush1.bf16.msra.mxu0 %v1754_v8  ;;  %v151_v12 = vld [vmem:[%s2495_s4] sm:$0xff]  ;;  %v1756_v13 = vpack.c.bf16 %v168_v11, %v167_v10  ;;  %v152_v14 = vld [vmem:[%s2495_s4 + $0x8] sm:$0xff]  ;;  %v169_v15 = vld [vmem:[%s2495_s4 + $0x90] sm:$0xff]  ;;  %v1961_v3 = vmov 0.0|0.0   ;;  %vm1962_vm2 = vmmov 0   ;;  %vm365_vm4 = vcmask 523264  }
  0x11   :  { %v170_v16 = vld [vmem:[%s2495_s4 + $0x98] sm:$0xff]  ;;  %v1758_v17 = vpack.c.bf16 %v152_v14, %v151_v12  ;;  %v153_v19 = vld [vmem:[%s2495_s4 + $0x10] sm:$0xff]  ;;  %v171_v21 = vld [vmem:[%s2495_s4 + $0xa0] sm:$0xff]  ;;  %v64_v56 = vand.u32 127, %v63_v55  ;;  %1788 = vmatprep.subr.bf16.mxu0 %v1961_v3  ;;  %vm453_vm6 = vcmask 15360   ;;  %vm460_vm7 = vcmask 1041408  }
  0x12   :  { %v1760_v18 = vpack.c.bf16 %v170_v16, %v169_v15  ;;  %v154_v20 = vld [vmem:[%s2495_s4 + $0x18] sm:$0xff]  ;;  %1757 = vmatprep.subr.bf16.mxu1 %v1756_v13  ;;  %v172_v22 = vld [vmem:[%s2495_s4 + $0xa8] sm:$0xff]  ;;  %v155_v25 = vld [vmem:[%s2495_s4 + $0x20] sm:$0xff]  ;;  %vm541_vm8 = vcmask 64512   ;;  %vm633_vm9 = vcmask 261120   ;;  %vm913_vm10 = vcmask 1043456  }
  0x13   :  { %1759 = vmatpush3.bf16.msra.mxu1 %v1758_v17  ;;  %v1762_v23 = vpack.c.bf16 %v154_v20, %v153_v19  ;;  %v1764_v24 = vpack.c.bf16 %v172_v22, %v171_v21  ;;  %v156_v26 = vld [vmem:[%s2495_s4 + $0x28] sm:$0xff]  ;;  %v173_v27 = vld [vmem:[%s2495_s4 + $0xb0] sm:$0xff]  ;;  %v174_v28 = vld [vmem:[%s2495_s4 + $0xb8] sm:$0xff]  ;;  %vm1963_vm11 = vmmov 1   ;;  %vm906_vm13 = vcmask 97280   ;;  %s2522_s25 = sld [smem:[#allocation7_spill]] }
  0x14   :  { %1761 = vmatprep.subr.bf16.mxu1 %v1760_v18  ;;  %v1766_v29 = vpack.c.bf16 %v156_v26, %v155_v25  ;;  %v1768_v30 = vpack.c.bf16 %v174_v28, %v173_v27  ;;  %v157_v31 = vld [vmem:[%s2495_s4 + $0x30] sm:$0xff]  ;;  %v158_v32 = vld [vmem:[%s2495_s4 + $0x38] sm:$0xff]  ;;  %v175_v33 = vld [vmem:[%s2495_s4 + $0xc0] sm:$0xff]  ;;  %vm1006_vm14 = vcmask 785408   ;;  %s2523_s29 = sld [smem:[#allocation9_spill]]  ;;  %s1966_s21 = smov [#allocation2]  }
  0x15   :  { %v343_v9 = vld [vmem:[%s2521_s28] sm:$0xff]  ;;  %v176_v34 = vld [vmem:[%s2495_s4 + $0xc8] sm:$0xff]  ;;  %v1770_v35 = vpack.c.bf16 %v158_v32, %v157_v31  ;;  %v177_v39 = vld [vmem:[%s2495_s4 + $0xd0] sm:$0xff]  ;;  %s1472_s1 = sshll.u32 %s1966_s21, 4  ;;  %s1473_s1 = int_to_ptr.vmem [resolvable:$true] %s1472_s1 }
  0x16   :  { %346 = vperm.xlu0 %1915, %v343_v9   ;;  %v1772_v36 = vpack.c.bf16 %v176_v34, %v175_v33  ;;  %v159_v37 = vld [vmem:[%s2495_s4 + $0x40] sm:$0xff]  ;;  %v160_v38 = vld [vmem:[%s2495_s4 + $0x48] sm:$0xff]  ;;  %v178_v40 = vld [vmem:[%s2495_s4 + $0xd8] sm:$0xff]  ;;  %s1935_s22 = scalar_lea.vmem %s1473_s1, 256  ;;  %p1940_p1 = scmp.lt.s32.totalorder %s1473_s1, %s1473_s1 }
  0x17   :  { %1763 = vmatpush3.bf16.msra.mxu1 %v1762_v23  ;;  %v1774_v41 = vpack.c.bf16 %v160_v38, %v159_v37  ;;  %v1776_v42 = vpack.c.bf16 %v178_v40, %v177_v39  ;;  %v161_v43 = vld [vmem:[%s2495_s4 + $0x50] sm:$0xff]  ;;  %v162_v44 = vld [vmem:[%s2495_s4 + $0x58] sm:$0xff]  ;;  %v179_v45 = vld [vmem:[%s2495_s4 + $0xe0] sm:$0xff]  ;;  %p1936_p0 = scmp.ne.s32.totalorder %s1473_s1, %s1935_s22  ;;  %p1941_p2 = scmp.lt.s32.totalorder %s1935_s22, %s1935_s22 }
  0x18   :  { %1765 = vmatprep.subr.bf16.mxu1 %v1764_v24  ;;  %v180_v46 = vld [vmem:[%s2495_s4 + $0xe8] sm:$0xff]  ;;  %v1778_v47 = vpack.c.bf16 %v162_v44, %v161_v43  ;;  %v163_v49 = vld [vmem:[%s2495_s4 + $0x60] sm:$0xff]  ;;  %v181_v51 = vld [vmem:[%s2495_s4 + $0xf0] sm:$0xff] }
  0x19   :  { %v1780_v48 = vpack.c.bf16 %v180_v46, %v179_v45  ;;  %v164_v50 = vld [vmem:[%s2495_s4 + $0x68] sm:$0xff]  ;;  %v182_v52 = vld [vmem:[%s2495_s4 + $0xf8] sm:$0xff]  ;;  %v165_v59 = vld [vmem:[%s2495_s4 + $0x70] sm:$0xff]  ;;  %p1942_p3 = por %p1941_p2, %p1940_p1 }
  0x1a   :  { %v1782_v53 = vpack.c.bf16 %v164_v50, %v163_v49  ;;  %v1784_v54 = vpack.c.bf16 %v182_v52, %v181_v51  ;;  %v166_v60 = vld [vmem:[%s2495_s4 + $0x78] sm:$0xff]  ;;  %v261_v0 = vld [vmem:[%s2497_s6] sm:$0xff]  ;;  %v262_v1 = vld [vmem:[%s2497_s6 + $0x8] sm:$0xff] }
  0x1b   :  { %1767 = vmatpush3.bf16.msra.mxu1 %v1766_v29  ;;  %v1786_v61 = vpack.c.bf16 %v166_v60, %v165_v59  ;;  %v1789_v2 = vpack.c.bf16 %v262_v1, %v261_v0  ;;  %v344_v4 = vld [vmem:[%s2521_s28 + $0x8] sm:$0xff]  ;;  %v357_v5 = vld [vmem:[%s2499_s8] sm:$0xff]  ;;  %v359_v14 = vld [vmem:[%s2499_s8 + $0x10] sm:$0xff]  ;;  %s1965_s28 = smov 64   ;;  %p1943_p4 = pnand %p1942_p3, %p1936_p0 }
  0x1c   :  { %1769 = vmatprep.subr.bf16.mxu1 %v1768_v30  ;;  %v358_v7 = vld [vmem:[%s2499_s8 + $0x8] sm:$0xff]  ;;  %349 = vperm.xlu1 %1916, %v344_v4   ;;  %v1485_v10 = vld [vmem:[%s2496_s5] ss:$0 sm:$0xff]  ;;  %v360_v15 = vld [vmem:[%s2499_s8 + $0x18] sm:$0xff] }
  0x1d   :  { %v1791_v8 = vpack.c.bf16 %v358_v7, %v357_v5  ;;  %v1795_v18 = vpack.c.bf16 %v360_v15, %v359_v14  ;;  %v361_v19 = vld [vmem:[%s2499_s8 + $0x20] sm:$0xff]  ;;  %v362_v20 = vld [vmem:[%s2499_s8 + $0x28] sm:$0xff]  ;;  %v363_v23 = vld [vmem:[%s2499_s8 + $0x30] sm:$0xff] }
  0x1e   :  { %v1799_v22 = vpack.c.bf16 %v362_v20, %v361_v19  ;;  %v364_v24 = vld [vmem:[%s2499_s8 + $0x38] sm:$0xff]  ;;  %v451_v28 = vld [vmem:[%s2508_s17] sm:$0xff]  ;;  %v452_v33 = vld [vmem:[%s2508_s17 + $0x8] sm:$0xff] }
  0x1f   :  { %1771 = vmatpush3.bf16.msra.mxu1 %v1770_v35  ;;  %v1803_v25 = vpack.c.bf16 %v364_v24, %v363_v23  ;;  %v1486_v29 = vld [vmem:[%s2498_s7] ss:$0 sm:$0xff]  ;;  %v626_v37 = vld [vmem:[%s2505_s14 + $0x8] sm:$0xff]  ;;  %v628_v38 = vld [vmem:[%s2505_s14 + $0x18] sm:$0xff] }
  0x20   :  { %1773 = vmatprep.subr.bf16.mxu1 %v1772_v36  ;;  %v540_v36 = vld [vmem:[%s2504_s13 + $0x8] sm:$0xff]  ;;  %v539_v39 = vld [vmem:[%s2504_s13] sm:$0xff]  ;;  %v1807_v40 = vpack.c.bf16 %v628_v38, %v626_v37  ;;  %v739_v46 = vld [vmem:[%s2502_s11 + $0x90] sm:$0xff] }
  0x21   :  { %v721_v43 = vld [vmem:[%s2502_s11] sm:$0xff]  ;;  %v722_v45 = vld [vmem:[%s2502_s11 + $0x8] sm:$0xff]  ;;  %v723_v50 = vld [vmem:[%s2502_s11 + $0x10] sm:$0xff] }
  0x22   :  { %v724_v51 = vld [vmem:[%s2502_s11 + $0x18] sm:$0xff]  ;;  %v741_v52 = vld [vmem:[%s2502_s11 + $0xa0] sm:$0xff]  ;;  %v743_v59 = vld [vmem:[%s2502_s11 + $0xb0] sm:$0xff] }
  0x23   :  { %1775 = vmatpush3.bf16.msra.mxu1 %v1774_v41  ;;  %v737_v41 = vld [vmem:[%s2502_s11 + $0x80] sm:$0xff]  ;;  %v744_v60 = vld [vmem:[%s2502_s11 + $0xb8] sm:$0xff]  ;;  %v730_v7 = vld [vmem:[%s2502_s11 + $0x48] sm:$0xff] }
  0x24   :  { %1777 = vmatprep.subr.bf16.mxu1 %v1776_v42  ;;  %v738_v42 = vld [vmem:[%s2502_s11 + $0x88] sm:$0xff]  ;;  %v728_v0 = vld [vmem:[%s2502_s11 + $0x38] sm:$0xff]  ;;  %v745_v1 = vld [vmem:[%s2502_s11 + $0xc0] sm:$0xff] }
  0x25   :  { %v1815_v44 = vpack.c.bf16 %v738_v42, %v737_v41  ;;  %v729_v5 = vld [vmem:[%s2502_s11 + $0x40] sm:$0xff]  ;;  %v732_v24 = vld [vmem:[%s2502_s11 + $0x58] sm:$0xff]  ;;  %v735_v37 = vld [vmem:[%s2502_s11 + $0x70] sm:$0xff] }
  0x26   :  { %v828_v20 = vld [vmem:[%s2506_s15] sm:$0xff]  ;;  %v736_v38 = vld [vmem:[%s2502_s11 + $0x78] sm:$0xff]  ;;  %vm1848_vm12 = vmpackc.low %vm913_vm10, %vm1963_vm11 }
  0x27   :  { %1779 = vmatpush3.bf16.msra.mxu1 %v1778_v47  ;;  %v740_v47 = vld [vmem:[%s2502_s11 + $0x98] sm:$0xff]  ;;  %vm1886_vm15 = vmpackc.low %vm633_vm9, %vm633_vm9 }
  0x28   :  { %1781 = vmatprep.subr.bf16.mxu1 %v1780_v48  ;;  %v1817_v48 = vpack.c.bf16 %v722_v45, %v721_v43  ;;  %v1819_v49 = vpack.c.bf16 %v740_v47, %v739_v46 }
  0x2b   :  { %1783 = vmatpush3.bf16.msra.mxu1 %v1782_v53  ;;  %v742_v53 = vld [vmem:[%s2502_s11 + $0xa8] sm:$0xff] }
  0x2c   :  { %1785 = vmatprep.subr.bf16.mxu1 %v1784_v54  ;;  %v1821_v54 = vpack.c.bf16 %v724_v51, %v723_v50 }
  0x2f   :  { %1787 = vmatpush3.bf16.msra.mxu1 %v1786_v61 }
  0x30   :  { %1816 = vmatprep.subr.bf16.mxu1 %v1815_v44 }
  0x8c   :  { %v68_v57 = vpop.permute.xlu0 %67 }
  0x8d   :  { %vm69_vm1 = vcmp.eq.s32.totalorder %v64_v56, %v68_v57  ;;  %v725_v57 = vld [vmem:[%s2502_s11 + $0x20] sm:$0xff] }
  0x8e   :  { %v1483_v58 = vsel %vm69_vm1, 1.0, %v1960_v6 }
  0x8f   :  { %1484 = vmatmul.mubr.msk.f32.vlgmr.msra.gmra.mrb[0].mxu0 %vm76_vm0, %v1483_v58  ;;  %v726_v58 = vld [vmem:[%s2502_s11 + $0x28] sm:$0xff] }
  0x90   :  { %1790 = vmatpush3.bf16.msra.mxu0 %v1789_v2  ;;  %1650 = vmatprep.mubr.msk.f32.mxu0 %vm1962_vm2, %v1960_v6  ;;  %v1825_v61 = vpack.c.bf16 %v726_v58, %v725_v57  ;;  %v746_v2 = vld [vmem:[%s2502_s11 + $0xc8] sm:$0xff]  ;;  %v994_v58 = vld [vmem:[%s2503_s12] sm:$0xff] }
  0x91   :  { %1792 = vmatprep.subr.bf16.mxu0 %v1791_v8  ;;  %v1831_v4 = vpack.c.bf16 %v746_v2, %v745_v1  ;;  %v997_v1 = vld [vmem:[%s2503_s12 + $0x18] sm:$0xff] }
  0x95   :  { %v347_v12 = vpop.permute.xlu0 %346 }
  0x96   :  { %vm351_vm3 = vcmp.eq.s32.totalorder %v64_v56, %v347_v12  ;;  %v632_v12 = vld [vmem:[%s2505_s14 + $0x38] sm:$0xff] }
  0x97   :  { %v1488_v21 = vsel %vm351_vm3, 1.0, %v1960_v6 }
  0x9b   :  { %v350_v26 = vpop.permute.xlu1 %349 }
  0x9c   :  { %vm352_vm5 = vcmp.eq.s32.totalorder %v64_v56, %v350_v26  ;;  %v1823_v56 = vpack.c.bf16 %v742_v53, %v741_v52  ;;  %v749_v26 = vld [vmem:[%s2502_s11 + $0xe0] sm:$0xff] }
  0x9d   :  { %v1489_v27 = vsel %vm352_vm5, 1.0, %v1960_v6 }
 0x162   :  { %v146_v62 = vpop.f32.mrb[0].mxu0 }
 0x163   :  { %v148_v63 = vpop.f32.mrb[1].mxu0 }
 0x164   :  { %254 = vmatprep.mubr.f32.mxu1 %v148_v63  ;;  %v727_v63 = vld [vmem:[%s2502_s11 + $0x30] sm:$0xff] }
 0x165   :  { %255 = vmatmul.mubr.f32.vlgmr.msra.gmra.mrb[0].mxu1 %v146_v62  ;;  %v1827_v62 = vpack.c.bf16 %v744_v60, %v743_v59  ;;  %v1829_v3 = vpack.c.bf16 %v728_v0, %v727_v63  ;;  %v995_v59 = vld [vmem:[%s2503_s12 + $0x8] sm:$0xff]  ;;  %v996_v0 = vld [vmem:[%s2503_s12 + $0x10] sm:$0xff] }
 0x166   :  { %1818 = vmatpush3.bf16.msra.mxu1 %v1817_v48  ;;  %v1853_v60 = vpack.c.bf16 %v995_v59, %v994_v58 }
 0x167   :  { %1820 = vmatprep.subr.bf16.mxu1 %v1819_v49 }
 0x16a   :  { %1822 = vmatpush3.bf16.msra.mxu1 %v1821_v54  ;;  %v904_v54 = vld [vmem:[%s2507_s16] sm:$0xff] }
 0x16b   :  { %1824 = vmatprep.subr.bf16.mxu1 %v1823_v56  ;;  %v905_v56 = vld [vmem:[%s2507_s16 + $0x8] sm:$0xf] }
 0x16c   :  { %v1847_v57 = vpack.c.bf16 %v905_v56, %v904_v54 }
 0x16e   :  { %1826 = vmatpush3.bf16.msra.mxu1 %v1825_v61 }
 0x16f   :  { %1828 = vmatprep.subr.bf16.mxu1 %v1827_v62 }
 0x172   :  { %1830 = vmatpush3.bf16.msra.mxu1 %v1829_v3 }
 0x173   :  { %1832 = vmatprep.subr.bf16.mxu1 %v1831_v4 }
 0x238   :  { %v1548_v9 = vpop.f32.mrb[0].mxu1 }
 0x239   :  { %v1549_v11 = vpop.f32.mrb[1].mxu1 }
 0x23a   :  { %v1550_v13 = vadd.f32 %v1549_v11, %v1548_v9  ;;  %v625_v9 = vld [vmem:[%s2505_s14] sm:$0xff]  ;;  %v630_v11 = vld [vmem:[%s2505_s14 + $0x28] sm:$0xff] }
 0x23b   :  { %v1811_v15 = vpack.c.bf16 %v632_v12, %v630_v11  ;;  %v1001_v11 = vld [vmem:[%s2503_s12 + $0x38] sm:$0xff] }
 0x23c   :  { %v257_v16 = vadd.f32 %v1550_v13, %v1485_v10  ;;  %v627_v10 = vld [vmem:[%s2505_s14 + $0x10] sm:$0xff] }
 0x23d   :  { %v1809_v13 = vpack.c.bf16 %v627_v10, %v625_v9  ;;  %v1000_v10 = vld [vmem:[%s2503_s12 + $0x30] sm:$0xff] }
 0x23e   :  { %v260_v17 = vmax.f32 %v257_v16, 0.0  ;;  %v629_v16 = vld [vmem:[%s2505_s14 + $0x20] sm:$0xff]  ;;  %v1865_v12 = vpack.c.bf16 %v1001_v11, %v1000_v10 }
 0x240   :  { %1651 = vmatmul.mubr.msk.f32.vlgmr.msra.gmra.mrb[2].mxu0 %vm76_vm0, %v260_v17  ;;  %v631_v17 = vld [vmem:[%s2505_s14 + $0x30] sm:$0xff] }
 0x241   :  { %1669 = vmatprep.mubr.msk.f32.mxu0 %vm365_vm4, %v1488_v21  ;;  %1794 = vmatpush3.bf16.msra.mxu0 %v1791_v8  ;;  %v1833_v8 = vpack.c.bf16 %v730_v7, %v729_v5  ;;  %v1813_v19 = vpack.c.bf16 %v631_v17, %v629_v16  ;;  %v747_v21 = vld [vmem:[%s2502_s11 + $0xd0] sm:$0xff]  ;;  %v1857_v5 = vpack.c.bf16 %v997_v1, %v996_v0  ;;  %v998_v7 = vld [vmem:[%s2503_s12 + $0x20] sm:$0xff]  ;;  %v1005_v17 = vld [vmem:[%s2503_s12 + $0x58] sm:$0xff] }
 0x242   :  { %1796 = vmatprep.subr.bf16.mxu0 %v1795_v18  ;;  %v1004_v16 = vld [vmem:[%s2503_s12 + $0x50] sm:$0xff] }
 0x243   :  { %1834 = vmatpush3.bf16.msra.mxu1 %v1833_v8  ;;  %v999_v8 = vld [vmem:[%s2503_s12 + $0x28] sm:$0xff] }
 0x244   :  { %v1861_v9 = vpack.c.bf16 %v999_v8, %v998_v7  ;;  %v1379_v7 = vld [vmem:[%s2523_s29 + $0x8] sm:$0xff] }
 0x245   :  { %1798 = vmatpush3.bf16.msra.mxu0 %v1795_v18 }
 0x246   :  { %1800 = vmatprep.subr.bf16.mxu0 %v1799_v22 }
 0x249   :  { %1802 = vmatpush3.bf16.msra.mxu0 %v1799_v22  ;;  %v748_v22 = vld [vmem:[%s2502_s11 + $0xd8] sm:$0xff] }
 0x24a   :  { %1804 = vmatprep.subr.bf16.mxu0 %v1803_v25  ;;  %v1835_v23 = vpack.c.bf16 %v748_v22, %v747_v21 }
 0x24c   :  { %1836 = vmatprep.subr.bf16.mxu1 %v1835_v23  ;;  %v449_v23 = vld [vmem:[%s2500_s9 + $0x10] sm:$0xff] }
 0x24d   :  { %1806 = vmatpush3.bf16.msra.mxu0 %v1803_v25 }
 0x250   :  { %1670 = vmatmul.mubr.msk.f32.vlgmr.msra.gmra.mrb[4].mxu0 %vm365_vm4, %v1489_v27  ;;  %v750_v27 = vld [vmem:[%s2502_s11 + $0xe8] sm:$0xff] }
 0x251   :  { %1674 = vmatprep.mubr.msk.f32.mxu0 %vm453_vm6, %v451_v28  ;;  %v1839_v28 = vpack.c.bf16 %v750_v27, %v749_v26 }
 0x313   :  { %v339_v30 = vpop.f32.mrb[2].mxu0 }
 0x314   :  { %v340_v31 = vadd.f32 %v1486_v29, %v339_v30  ;;  %v1652_v32 = vpop.f32.mrb[3].mxu0  ;;  %v733_v29 = vld [vmem:[%s2502_s11 + $0x60] sm:$0xff]  ;;  %v734_v30 = vld [vmem:[%s2502_s11 + $0x68] sm:$0xff] }
 0x315   :  { %v751_v32 = vld [vmem:[%s2502_s11 + $0xf0] sm:$0xff] }
 0x316   :  { %1672 = vmatprep.subr.msk.mxu0 %vm460_vm7, %v340_v31 }
 0x317   :  { %1673 = vmatpush3.msk.msra.mxu0 %vm460_vm7, %v340_v31  ;;  %v1841_v31 = vpack.c.bf16 %v734_v30, %v733_v29 }
 0x318   :  { %1675 = vmatmul.mubr.msk.f32.vlgmr.msra.gmra.mrb[6].mxu0 %vm453_vm6, %v452_v33  ;;  %548 = vmatprep.subr.mxu0 %v540_v36  ;;  %v752_v33 = vld [vmem:[%s2502_s11 + $0xf8] sm:$0xff] }
 0x319   :  { %612 = vmatprep.mubr.f32.mxu0 %v1960_v6  ;;  %549 = vmatpush1.msra.mxu0 %v539_v39  ;;  %v1843_v36 = vpack.c.bf16 %v752_v33, %v751_v32  ;;  %v1845_v39 = vpack.c.bf16 %v736_v38, %v735_v37  ;;  %v1258_v37 = vld [vmem:[%s2522_s25] sm:$0x1] }
 0x31a   :  { %1808 = vmatprep.subr.bf16.mxu0 %v1807_v40  ;;  %v1259_v38 = vsub.f32 1.0, %v1258_v37 }
 0x323   :  { %v2239_v34 = vpop.f32.mrb[4].mxu0 }
 0x324   :  { %v2241_v35 = vpop.f32.mrb[5].mxu0 }
 0x3eb   :  { %v1676_v14 = vpop.f32.mrb[6].mxu0 }
 0x3ec   :  { %v530_v18 = vpop.f32.mrb[7].mxu0 }
 0x3ed   :  { %1495 = vmatmul.mubr.msk.f32.vlgmr.msra.gmra.mrb[8].mxu0 %vm541_vm8, %v530_v18 }
 0x3ee   :  { %1810 = vmatpush1.bf16.msra.mxu0 %v1809_v13  ;;  %618 = vmatprep.mubr.f32.mxu0 %v1960_v6  ;;  %v1002_v13 = vld [vmem:[%s2503_s12 + $0x40] sm:$0xff] }
 0x3ef   :  { %1812 = vmatprep.subr.bf16.mxu0 %v1811_v15 }
 0x3f1   :  { %1496 = vmatmul.mubr.msk.f32.gmra.mrb[10].mxu0 %vm541_vm8, %v1676_v14 }
 0x3f2   :  { %1814 = vmatpush1.bf16.msra.mxu0 %v1813_v19  ;;  %704 = vmatprep.mubr.f32.mxu0 %v1960_v6  ;;  %v447_v19 = vld [vmem:[%s2500_s9] sm:$0xff] }
 0x3f3   :  { %1677 = vmatprep.subr.mxu0 %v828_v20 }
 0x3f5   :  { %1497 = vmatmul.mubr.msk.f32.vlgmr.msra.gmra.mrb[12].mxu0 %vm633_vm9, %v2241_v35 }
 0x3f6   :  { %710 = vmatprep.mubr.f32.mxu0 %v1960_v6  ;;  %1678 = vmatpush3.msra.mxu0 %v828_v20  ;;  %v731_v6 = vld [vmem:[%s2502_s11 + $0x50] sm:$0xff]  ;;  %v448_v20 = vld [vmem:[%s2500_s9 + $0x8] sm:$0xff] }
 0x3f7   :  { %v1837_v25 = vpack.c.bf16 %v732_v24, %v731_v6  ;;  %1849 = vmatprep.subr.msk.bf16.mxu0 %vm1848_vm12, %v1847_v57  ;;  %v1877_v21 = vpack.c.bf16 %v448_v20, %v447_v19  ;;  %v450_v6 = vld [vmem:[%s2500_s9 + $0x18] sm:$0xff]  ;;  %s1964_s9 = smov 96  }
 0x3f8   :  { %v1881_v27 = vpack.c.bf16 %v450_v6, %v449_v23 }
 0x3f9   :  { %1498 = vmatmul.mubr.msk.f32.gmra.mrb[14].mxu0 %vm633_vm9, %v2239_v34  ;;  %1838 = vmatpush3.bf16.msra.mxu1 %v1837_v25 }
 0x3fa   :  { %1679 = vmatprep.mubr.msk.f32.mxu0 %vm541_vm8, %v530_v18  ;;  %1840 = vmatprep.subr.bf16.mxu1 %v1839_v28  ;;  %v1873_v18 = vpack.c.bf16 %v1005_v17, %v1004_v16 }
 0x3fd   :  { %1680 = vmatmul.mubr.msk.f32.vlgmr.msra.gmra.mrb[16].mxu0 %vm541_vm8, %v1676_v14  ;;  %1842 = vmatpush3.bf16.msra.mxu1 %v1841_v31  ;;  %v1003_v14 = vld [vmem:[%s2503_s12 + $0x48] sm:$0xff] }
 0x3fe   :  { %1844 = vmatprep.subr.bf16.mxu1 %v1843_v36  ;;  %1852 = vmatpush3.bf16.msk.msra.mxu0 %vm1848_vm12, %v1847_v57  ;;  %v1869_v15 = vpack.c.bf16 %v1003_v14, %v1002_v13  ;;  %v1380_v13 = vld [vmem:[%s2523_s29 + $0x10] sm:$0xff]  ;;  %v1381_v14 = vld [vmem:[%s2523_s29 + $0x18] sm:$0xff] }
 0x3ff   :  { %1854 = vmatprep.subr.bf16.mxu0 %v1853_v60  ;;  %v1899_v17 = vpack.c.bf16 %v1381_v14, %v1380_v13 }
 0x401   :  { %1846 = vmatpush3.bf16.msra.mxu1 %v1845_v39  ;;  %v1263_v39 = vshrl.u32 %v63_v55, 7 }
 0x4c0   :  { %v614_v40 = vpop.f32.mrb[8].mxu0 }
 0x4c1   :  { %v616_v41 = vpop.f32.mrb[9].mxu0 }
 0x4c4   :  { %v620_v42 = vpop.f32.mrb[10].mxu0 }
 0x4c5   :  { %v622_v43 = vpop.f32.mrb[11].mxu0 }
 0x4c8   :  { %v706_v44 = vpop.f32.mrb[12].mxu0 }
 0x4c9   :  { %v717_v45 = vmul.f32 %v706_v44, %v614_v40  ;;  %v708_v46 = vpop.f32.mrb[13].mxu0  ;;  %v1260_v40 = vmul.f32 -1e+09, %v1259_v38 }
 0x4ca   :  { %v718_v47 = vmul.f32 %v708_v46, %v616_v41  ;;  %v1264_v41 = vsub.s32 0, %v1263_v39  ;;  %v1254_v46 = vld [vmem:[%s2509_s18] sm:$0xff] }
 0x4cc   :  { %v712_v48 = vpop.f32.mrb[14].mxu0  ;;  %817 = vmatprep.mubr.f32.mxu1 %v718_v47  ;;  %v1265_v47 = vrot.slane %v1260_v40, %v1264_v41 }
 0x4cd   :  { %v719_v49 = vmul.f32 %v712_v48, %v620_v42  ;;  %v714_v50 = vpop.f32.mrb[15].mxu0  ;;  %818 = vmatmul.mubr.f32.vlgmr.msra.gmra.mrb[2].mxu1 %v717_v45 }
 0x4ce   :  { %v720_v51 = vmul.f32 %v714_v50, %v622_v43  ;;  %v1255_v43 = vld [vmem:[%s2509_s18 + $0x8] sm:$0xff] }
 0x4d0   :  { %822 = vmatprep.mubr.f32.mxu1 %v720_v51  ;;  %v1681_v52 = vpop.f32.mrb[16].mxu0 }
 0x4d1   :  { %823 = vmatmul.mubr.f32.gmra.mrb[4].mxu1 %v719_v49  ;;  %v895_v53 = vpop.f32.mrb[17].mxu0 }
 0x5a0   :  { %v1599_v61 = vpop.f32.mrb[2].mxu1 }
 0x5a1   :  { %v1600_v62 = vpop.f32.mrb[3].mxu1 }
 0x5a2   :  { %v1601_v63 = vadd.f32 %v1600_v62, %v1599_v61 }
 0x5a4   :  { %v1602_v2 = vpop.f32.mrb[4].mxu1  ;;  %1686 = vmatprep.mubr.msk.f32.mxu0 %vm906_vm13, %v1601_v63 }
 0x5a5   :  { %v1603_v3 = vpop.f32.mrb[5].mxu1 }
 0x5a6   :  { %v1604_v4 = vadd.f32 %v1603_v3, %v1602_v2 }
 0x5a8   :  { %1687 = vmatmul.mubr.msk.f32.vlgmr.msra.gmra.mrb[18].mxu0 %vm906_vm13, %v1604_v4 }
 0x5a9   :  { %1856 = vmatpush3.bf16.msra.mxu0 %v1853_v60 }
 0x5aa   :  { %1858 = vmatprep.subr.bf16.mxu0 %v1857_v5 }
 0x5ad   :  { %1860 = vmatpush3.bf16.msra.mxu0 %v1857_v5  ;;  %v1378_v5 = vld [vmem:[%s2523_s29] sm:$0xff] }
 0x5ae   :  { %1862 = vmatprep.subr.bf16.mxu0 %v1861_v9  ;;  %v1895_v8 = vpack.c.bf16 %v1379_v7, %v1378_v5 }
 0x5b1   :  { %1864 = vmatpush3.bf16.msra.mxu0 %v1861_v9 }
 0x5b2   :  { %1866 = vmatprep.subr.bf16.mxu0 %v1865_v12 }
 0x5b5   :  { %1868 = vmatpush3.bf16.msra.mxu0 %v1865_v12 }
 0x5b6   :  { %1870 = vmatprep.subr.bf16.mxu0 %v1869_v15 }
 0x5b9   :  { %1872 = vmatpush3.bf16.msra.mxu0 %v1869_v15 }
 0x5ba   :  { %1874 = vmatprep.subr.bf16.mxu0 %v1873_v18 }
 0x5bd   :  { %1876 = vmatpush3.bf16.msra.mxu0 %v1873_v18 }
 0x5be   :  { %1878 = vmatprep.subr.bf16.mxu0 %v1877_v21 }
 0x67b   :  { %v1688_v22 = vpop.f32.mrb[18].mxu0 }
 0x67c   :  { %v993_v24 = vmul.f32 %v1688_v22, %v1681_v52  ;;  %v983_v25 = vpop.f32.mrb[19].mxu0 }
 0x67d   :  { %v992_v26 = vmul.f32 %v983_v25, %v895_v53 }
 0x67f   :  { %1713 = vmatprep.mubr.msk.f32.mxu0 %vm1006_vm14, %v992_v26 }
 0x680   :  { %1714 = vmatmul.mubr.msk.f32.vlgmr.msra.gmra.mrb[20].mxu0 %vm1006_vm14, %v993_v24 }
 0x681   :  { %1880 = vmatpush3.bf16.msra.mxu0 %v1877_v21  ;;  %1724 = vmatprep.mubr.msk.f32.mxu0 %vm633_vm9, %v2241_v35 }
 0x682   :  { %1882 = vmatprep.subr.bf16.mxu0 %v1881_v27 }
 0x685   :  { %1884 = vmatpush3.bf16.msra.mxu0 %v1881_v27 }
 0x688   :  { %1725 = vmatmul.mubr.msk.f32.vlgmr.msra.gmra.mrb[20].mxu0 %vm633_vm9, %v2239_v34 }
 0x75b   :  { %v1726_v28 = vpop.f32.mrb[20].mxu0 }
 0x75c   :  { %v1154_v29 = vpop.f32.mrb[21].mxu0 }
 0x75d   :  { %v1922_v30 = vpack.i.bf16 %v1726_v28, %v1154_v29  ;;  %1731 = vmatprep.mubr.msk.f32.mxu1 %vm633_vm9, %v1154_v29 }
 0x75f   :  { %1918 = vrot.lane.b32.xlu1 %v1922_v30, %s1964_s9 }
 0x7d1   :  { %v1919_v31 = vpop.permute.xlu1 %1918 }
 0x7d2   :  { %v1921_v32 = vunpack.i.h.bf16 %v1919_v31  ;;  %v1920_v33 = vunpack.i.l.bf16 %v1919_v31 }
 0x7d4   :  { %v1885_v36 = vpack.c.bf16 %v1921_v32, %v1920_v33 }
 0x7d6   :  { %1887 = vmatprep.subr.msk.bf16.mxu1 %vm1886_vm15, %v1885_v36 }
 0x7d7   :  { %1890 = vmatpush3.bf16.xpose.msk.msra.mxu1 %vm1886_vm15, %v1885_v36 }
 0x7de   :  { %1732 = vmatmul.mubr.msk.f32.vlgmr.msra.gmra.mrb[6].mxu1 %vm633_vm9, %v1726_v28 }
 0x8b1   :  { %v1733_v42 = vpop.f32.mrb[6].mxu1 }
 0x8b2   :  { %v1253_v44 = vmul.f32 0.17677669, %v1733_v42  ;;  %v1243_v45 = vpop.f32.mrb[7].mxu1 }
 0x8b3   :  { %v1252_v48 = vmul.f32 0.17677669, %v1243_v45 }
 0x8b4   :  { %v1257_v49 = vadd.f32 %v1255_v43, %v1253_v44 }
 0x8b5   :  { %v1256_v50 = vadd.f32 %v1254_v46, %v1252_v48 }
 0x8b6   :  { %v1268_v51 = vadd.f32 %v1265_v47, %v1257_v49 }
 0x8b7   :  { %v1267_v52 = vadd.f32 %v1265_v47, %v1256_v50 }
 0x8b8   :  { %v1272_v55 = vsel %vm76_vm0, %v1268_v51, -inf }
 0x8b9   :  { %1273 = vmax.xlane.f32.xlu1 %v1272_v55  ;;  %v1269_v53 = vsel %vm76_vm0, %v1267_v52, -inf }
 0x8ba   :  { %1270 = vmax.xlane.f32.xlu0 %v1269_v53 }
 0x8ca   :  { %1923 = vrot.lane.b32.xlu1 %v1922_v30, %s1965_s28 }
 0x946   :  { %v1274_v54 = vpop.xlane.xlu1 %1273 }
 0x947   :  { %v1276_v56 = vsub.f32 %v1268_v51, %v1274_v54  ;;  %v1271_v57 = vpop.xlane.xlu0 %1270 }
 0x948   :  { %v1275_v58 = vsub.f32 %v1267_v52, %v1271_v57 }
 0x949   :  { %v1279_v59 = vmul.f32 1.442695, %v1276_v56 }
 0x94a   :  { %v1277_v60 = vmul.f32 1.442695, %v1275_v58  ;;  %v1924_v61 = vpop.permute.xlu1 %1923 }
 0x94b   :  { %v1926_v62 = vunpack.i.h.bf16 %v1924_v61  ;;  %v1925_v63 = vunpack.i.l.bf16 %v1924_v61 }
 0x94c   :  { %1927 = vpow2.f32 %v1277_v60 }
 0x94d   :  { %v1891_v0 = vpack.c.bf16 %v1926_v62, %v1925_v63  ;;  %1929 = vpow2.f32 %v1279_v59 }
 0x94f   :  { %1892 = vmatprep.subr.bf16.mxu1 %v1891_v0 }
 0x950   :  { %1894 = vmatpush3.bf16.msra.mxu1 %v1891_v0 }
 0x951   :  { %1896 = vmatprep.subr.bf16.mxu1 %v1895_v8 }
 0x956   :  { %v1928_v1 = vpop.eup %1927 }
 0x957   :  { %v1281_v2 = vsel %vm76_vm0, %v1928_v1, 0.0  ;;  %v1930_v3 = vpop.eup %1929 }
 0x958   :  { %1282 = vadd.xlane.f32.xlu0 %v1281_v2  ;;  %v1284_v4 = vsel %vm76_vm0, %v1930_v3, 0.0 }
 0x95c   :  { %1285 = vadd.xlane.f32.xlu0 %v1284_v4 }
 0x9e5   :  { %v1283_v9 = vpop.xlane.xlu0 %1282 }
 0x9e6   :  { %1931 = vrcp.f32 %v1283_v9 }
 0x9e9   :  { %v1286_v10 = vpop.xlane.xlu0 %1285 }
 0x9ea   :  { %1933 = vrcp.f32 %v1286_v10 }
 0x9f0   :  { %v1932_v11 = vpop.eup %1931 }
 0x9f1   :  { %v1288_v12 = vmul.f32 %v1932_v11, %v1928_v1 }
 0x9f3   :  { %1738 = vmatprep.mubr.msk.f32.mxu1 %vm76_vm0, %v1288_v12 }
 0x9f4   :  { %v1934_v15 = vpop.eup %1933 }
 0x9f5   :  { %v1290_v16 = vmul.f32 %v1934_v15, %v1930_v3 }
 0x9f7   :  { %1739 = vmatmul.mubr.msk.f32.vlgmr.msra.gmra.mrb[8].mxu1 %vm76_vm0, %v1290_v16 }
 0x9f8   :  { %1898 = vmatpush3.bf16.msra.mxu1 %v1895_v8 }
 0x9f9   :  { %1900 = vmatprep.subr.bf16.mxu1 %v1899_v17 }
 0x9fc   :  { %1902 = vmatpush3.bf16.msra.mxu1 %v1899_v17 }
 0xaca   :  { %v1740_v18 = vpop.f32.mrb[8].mxu1 }
 0xacb   :  { %v1369_v19 = vpop.f32.mrb[9].mxu1 }
 0xacc   :  { %1749 = vmatprep.mubr.msk.f32.mxu1 %vm633_vm9, %v1369_v19 }
 0xacd   :  { %1750 = vmatmul.mubr.msk.f32.vlgmr.msra.gmra.mrb[10].mxu1 %vm633_vm9, %v1740_v18 }
 0xba0   :  { %v1751_v20 = vpop.f32.mrb[10].mxu1 }
 0xba1   :  { %v1464_v21 = vadd.f32 %v1751_v20, %v2239_v34  ;;  %v1454_v22 = vpop.f32.mrb[11].mxu1 }
 0xba2   :  { %v1463_v23 = vadd.f32 %v1454_v22, %v2241_v35 }
 0xba3   :  { %1466 = vst.msk [vmem:[#allocation2 + $0x8] sm:$0xff] %vm633_vm9, %v1464_v21 }
 0xba4   :  { %1465 = vst.msk [vmem:[#allocation2] sm:$0xff] %vm633_vm9, %v1463_v23 }
 0xba5   :  { %1946 = shalt.err (!%p1943_p4)
}
 0xba6   :  { %s1947_s14 = scalar_lea.hbm %s2510_s19, 256 }
 0xba7   :  { %p1948_p5 = scmp.ne.s32.totalorder %s2510_s19, %s1947_s14  ;;  %p1951_p6 = scmp.lt.u32.totalorder %s1947_s14, %s2510_s19 }
 0xba9   :  { %p1953_p7 = pnand %p1951_p6, %p1948_p5 }
 0xbab   :  { %1956 = shalt.err (!%p1953_p7)
}
 0xbac   :  { %s1967_s24 = smov 128   ;;  %s1968_s12 = smov 8  }
 0xbad   :  { %1478 = dma.vmem_to_hbm [thread:$0]  %s1473_s1, 256, %s2510_s19, [#allocation3], %s1967_s24, %s1967_s24, %s1968_s12  }
 0xbae   :  { %1957 = dma.done.wait [#allocation3], 256  }
 0xbaf   :  { %1958 = vsyncadd [#allocation3], 4294967040 }
 0xbb0   :  { %1482 = vsyncpa [#allocation3], 1 }

</bundles_post_ra>
